<compile_context>
chip_gen: v7x
topology: tpu7x:2x2x1
jax: 0.10.0
libtpu: 0.0.40
codegen_flags: <defaults>
</compile_context>

<pallas_src>
import functools

import jax
import jax.numpy as jnp
from jax.experimental import pallas as pl
from jax.experimental.pallas import tpu as pltpu


def _round_up(x, m):
    return ((x + m - 1) // m) * m


def _vmem_budget_bytes():
    """Chip-aware VMEM budget, leaving headroom for compiler-internal scratch."""
    try:
        kind = jax.devices()[0].device_kind.lower()
    except Exception:
        kind = ""
    if "v7" in kind or "7x" in kind:
        return 48 * 1024 * 1024    # v7x: 64 MiB total per TensorCore
    return 100 * 1024 * 1024       # v5e / v6e: 128 MiB total


def _pick_tiles(M, Hp, itemsize, budget):
    """Largest lane-dense tiles whose double-buffered working set fits budget."""
    tn = next(c for c in (512, 256, 128) if Hp % c == 0)
    tk = next(c for c in (2048, 1024, 512, 256, 128) if Hp % c == 0)
    # Working set: x stripe 2*tm*Hp + W 2*tk*tn + out 2*tm*tn + f32 acc tm*tn.
    fixed = 2 * tk * tn * itemsize + 2 * tn * itemsize + (64 << 10)
    per_row = 2 * Hp * itemsize + 2 * tn * itemsize + 4 * tn
    tm_cap = max(8, (budget - fixed) // per_row)
    tm = max(8, min(1024, _round_up(M, 8), (tm_cap // 8) * 8))
    Mp = _round_up(M, tm)
    # Keep >= 2 parallel (i, j) grid points for megacore sharding when it
    # costs no extra padding.
    if (Mp // tm) * (Hp // tn) < 2 and Mp >= 16 and (Mp // 2) % 8 == 0:
        tm = Mp // 2
    return tm, tn, tk


def _residual_linear_kernel(x_ref, w_ref, b_ref, o_ref, acc_ref, *, tk, tn):
    """One (tm, tn) output tile of  y = x + x @ W + b,  K-tiled on grid axis 2.

    x_ref holds the full-K resident LHS stripe (tm, Hp); both the matmul
    K-chunk and the residual columns are sliced from it in VMEM.
    """
    j = pl.program_id(1)
    k = pl.program_id(2)

    @pl.when(k == 0)
    def _():
        # Fold residual + bias into the accumulator init (saves two full
        # (tm, tn) VPU passes on the last K step).
        res_off = pl.multiple_of(j * tn, tn)
        res = x_ref[:, pl.ds(res_off, tn)].astype(jnp.float32)
        acc_ref[...] = res + b_ref[...].astype(jnp.float32)

    # MXU partial product from the resident stripe's K-chunk (lane-aligned).
    k_off = pl.multiple_of(k * tk, tk)
    acc_ref[...] += jnp.dot(
        x_ref[:, pl.ds(k_off, tk)], w_ref[...],
        preferred_element_type=jnp.float32,
    )

    @pl.when(k == pl.num_programs(2) - 1)
    def _():
        o_ref[...] = acc_ref[...].astype(o_ref.dtype)


def residual_linear(x, w, b, *, tm=None, tn=None, tk=None):
    """Residual(Linear): returns x + x @ w + b.

    x: (B, S, H), w: (H, H), b: (H,)
    """
    B, S, H = x.shape
    M = B * S
    dtype = x.dtype
    itemsize = jnp.dtype(dtype).itemsize

    Hp = _round_up(H, 128)                      # lane-dense K / N extent
    budget = _vmem_budget_bytes()
    a_tm, a_tn, a_tk = _pick_tiles(M, Hp, itemsize, budget)
    tm = a_tm if tm is None else tm
    tn = a_tn if tn is None else tn
    tk = a_tk if tk is None else tk
    Mp = _round_up(M, tm)

    # Zero-pad so padded K columns contribute 0 to the accumulator and the
    # output is lane-dense.  (W / b padding belongs at parameter init in a
    # real model; see note at top of file.)
    x2 = x.reshape(M, H)
    if (Mp, Hp) != (M, H):
        x2 = jnp.pad(x2, ((0, Mp - M), (0, Hp - H)))
    wp = jnp.pad(w, ((0, Hp - H), (0, Hp - H))) if Hp != H else w
    bp = (jnp.pad(b, (0, Hp - H)) if Hp != H else b).reshape(1, Hp)

    grid = (Mp // tm, Hp // tn, Hp // tk)

    # Realistic traffic: x streamed once, W re-streamed once per M stripe.
    cost = pl.CostEstimate(
        flops=2 * Mp * Hp * Hp + 2 * Mp * Hp,
        transcendentals=0,
        bytes_accessed=(Mp * Hp                       # x, read once
                        + (Mp // tm) * Hp * Hp        # W, once per M stripe
                        + (Mp // tm) * Hp             # bias
                        + Mp * Hp) * itemsize,        # output
    )

    kernel = functools.partial(_residual_linear_kernel, tk=tk, tn=tn)

    out2 = pl.pallas_call(
        kernel,
        out_shape=jax.ShapeDtypeStruct((Mp, Hp), dtype),
        grid_spec=pltpu.PrefetchScalarGridSpec(
            num_scalar_prefetch=0,
            grid=grid,
            in_specs=[
                # x: full-K resident stripe; block index varies only with i,
                # so it is DMA'd once per stripe and re-used across j and k.
                pl.BlockSpec((tm, Hp), lambda i, j, k: (i, 0)),
                # W: (tk, tn) tile, varies with (k, j).
                pl.BlockSpec((tk, tn), lambda i, j, k: (k, j)),
                # bias row: (1, tn), varies with j only.
                pl.BlockSpec((1, tn), lambda i, j, k: (0, j)),
            ],
            out_specs=pl.BlockSpec((tm, tn), lambda i, j, k: (i, j)),
            scratch_shapes=[pltpu.VMEM((tm, tn), jnp.float32)],
        ),
        compiler_params=pltpu.CompilerParams(
            dimension_semantics=("parallel", "parallel", "arbitrary"),
            vmem_limit_bytes=budget,
        ),
        cost_estimate=cost,
    )(x2, wp, bp)

    return out2[:M, :H].reshape(B, S, H)


if __name__ == "__main__":
    # Small deterministic shapes consistent with the forward pass.
    B, S, H = 2, 8, 32

    key = jax.random.PRNGKey(0)
    kx, kw, kb = jax.random.split(key, 3)
    x = jax.random.normal(kx, (B, S, H), dtype=jnp.float32)
    w = jax.random.normal(kw, (H, H), dtype=jnp.float32) * 0.1
    b = jax.random.normal(kb, (H,), dtype=jnp.float32) * 0.1

    out = residual_linear(x, w, b)
    out = jax.block_until_ready(out)

    # Pure-JAX reference for the same Residual(Linear) forward.
    ref = x + (jnp.einsum("bsh,hk->bsk", x, w) + b)
    assert out.shape == ref.shape and out.dtype == ref.dtype
    assert jnp.allclose(out, ref, atol=1e-4, rtol=1e-4), "mismatch vs reference"

    print("KERNEL_OK")
</pallas_src>

<mosaic_0001>
module attributes {stable_mosaic.version = 11 : i64} {
  func.func @_residual_linear_kernel(%arg0: i32, %arg1: i32, %arg2: i32, %arg3: memref<8x128xf32, #tpu.memory_space<vmem>>, %arg4: memref<128x128xf32, #tpu.memory_space<vmem>>, %arg5: memref<1x128xf32, #tpu.memory_space<vmem>>, %arg6: memref<8x128xf32, #tpu.memory_space<vmem>>, %arg7: memref<8x128xf32, #tpu.memory_space<vmem>>) attributes {dimension_semantics = [#tpu.dimension_semantics<parallel>, #tpu.dimension_semantics<parallel>, #tpu.dimension_semantics<arbitrary>], iteration_bounds = array<i64: 2, 1, 1>, scalar_prefetch = 0 : i64, scratch_operands = 1 : i64, tpu.core_type = #tpu.core_type<tc>, window_params = [{transform_indices = @transform_0, window_bounds = array<i64: 8, 128>}, {transform_indices = @transform_1, window_bounds = array<i64: 128, 128>}, {transform_indices = @transform_2, window_bounds = array<i64: 1, 128>}, {transform_indices = @transform_3, window_bounds = array<i64: 8, 128>}]} {
    %c0_i32 = arith.constant 0 : i32
    %0 = arith.cmpi eq, %arg2, %c0_i32 : i32
    %1 = arith.extui %0 : i1 to i32
    %c0_i32_0 = arith.constant 0 : i32
    %2 = arith.cmpi ne, %1, %c0_i32_0 : i32
    scf.if %2 {
      %c128_i32_9 = arith.constant 128 : i32
      %15 = arith.muli %arg1, %c128_i32_9 : i32
      %16 = tpu.assume_multiple %15, 128 : i32
      %c0_10 = arith.constant 0 : index
      %17 = arith.index_cast %16 : i32 to index
      %18 = vector.load %arg3[%c0_10, %17] : memref<8x128xf32, #tpu.memory_space<vmem>>, vector<8x128xf32>
      %c0_11 = arith.constant 0 : index
      %c0_12 = arith.constant 0 : index
      %19 = vector.load %arg5[%c0_11, %c0_12] : memref<1x128xf32, #tpu.memory_space<vmem>>, vector<1x128xf32>
      %20 = vector.broadcast %19 : vector<1x128xf32> to vector<8x128xf32>
      %21 = arith.addf %18, %20 : vector<8x128xf32>
      %c0_13 = arith.constant 0 : index
      %c0_14 = arith.constant 0 : index
      %22 = vector.load %arg7[%c0_13, %c0_14] : memref<8x128xf32, #tpu.memory_space<vmem>>, vector<8x128xf32>
      tpu.vector_store %arg7[%c0_13, %c0_14], %21 {strides = array<i32>} : memref<8x128xf32, #tpu.memory_space<vmem>>, vector<8x128xf32>,
    } else {
    }
    %c128_i32 = arith.constant 128 : i32
    %3 = arith.muli %arg2, %c128_i32 : i32
    %4 = tpu.assume_multiple %3, 128 : i32
    %c0 = arith.constant 0 : index
    %c0_1 = arith.constant 0 : index
    %5 = vector.load %arg7[%c0, %c0_1] : memref<8x128xf32, #tpu.memory_space<vmem>>, vector<8x128xf32>
    %c0_2 = arith.constant 0 : index
    %6 = arith.index_cast %4 : i32 to index
    %7 = vector.load %arg3[%c0_2, %6] : memref<8x128xf32, #tpu.memory_space<vmem>>, vector<8x128xf32>
    %c0_3 = arith.constant 0 : index
    %c0_4 = arith.constant 0 : index
    %8 = vector.load %arg4[%c0_3, %c0_4] : memref<128x128xf32, #tpu.memory_space<vmem>>, vector<128x128xf32>
    %cst = arith.constant dense<0.000000e+00> : vector<8x128xf32>
    %9 = tpu.matmul %7, %8, %cst {dimension_numbers = #tpu.dot_dimension_numbers<[1], [0], [0], [1], [0, 0, 1, 1], [], []>} : vector<8x128xf32>, vector<128x128xf32>, vector<8x128xf32> -> vector<8x128xf32>
    %10 = arith.addf %5, %9 : vector<8x128xf32>
    %c0_5 = arith.constant 0 : index
    %c0_6 = arith.constant 0 : index
    %11 = vector.load %arg7[%c0_5, %c0_6] : memref<8x128xf32, #tpu.memory_space<vmem>>, vector<8x128xf32>
    tpu.vector_store %arg7[%c0_5, %c0_6], %10 {strides = array<i32>} : memref<8x128xf32, #tpu.memory_space<vmem>>, vector<8x128xf32>,
    %c0_i32_7 = arith.constant 0 : i32
    %12 = arith.cmpi eq, %arg2, %c0_i32_7 : i32
    %13 = arith.extui %12 : i1 to i32
    %c0_i32_8 = arith.constant 0 : i32
    %14 = arith.cmpi ne, %13, %c0_i32_8 : i32
    scf.if %14 {
      %c0_9 = arith.constant 0 : index
      %c0_10 = arith.constant 0 : index
      %15 = vector.load %arg7[%c0_9, %c0_10] : memref<8x128xf32, #tpu.memory_space<vmem>>, vector<8x128xf32>
      %c0_11 = arith.constant 0 : index
      %c0_12 = arith.constant 0 : index
      %16 = vector.load %arg6[%c0_11, %c0_12] : memref<8x128xf32, #tpu.memory_space<vmem>>, vector<8x128xf32>
      tpu.vector_store %arg6[%c0_11, %c0_12], %15 {strides = array<i32>} : memref<8x128xf32, #tpu.memory_space<vmem>>, vector<8x128xf32>,
    } else {
    }
    return
  }
  func.func @transform_0(%arg0: i32, %arg1: i32, %arg2: i32) -> (i32, i32) {
    %c0_i32 = arith.constant 0 : i32
    %c0_i32_0 = arith.constant 0 : i32
    return %arg0, %c0_i32 : i32, i32
  }
  func.func @transform_1(%arg0: i32, %arg1: i32, %arg2: i32) -> (i32, i32) {
    %c0_i32 = arith.constant 0 : i32
    return %arg2, %arg1 : i32, i32
  }
  func.func @transform_2(%arg0: i32, %arg1: i32, %arg2: i32) -> (i32, i32) {
    %c0_i32 = arith.constant 0 : i32
    %c0_i32_0 = arith.constant 0 : i32
    return %c0_i32, %arg1 : i32, i32
  }
  func.func @transform_3(%arg0: i32, %arg1: i32, %arg2: i32) -> (i32, i32) {
    %c0_i32 = arith.constant 0 : i32
    return %arg0, %arg1 : i32, i32
  }
}

</mosaic_0001>

<bundles_post_ra>
// kernel: tpu_custom_call.1
= control target key start
LH: loop header
LB: loop body
LE: loop exit
PB: predicated region body
PF: predicated region fallthrough
CT: control target
= control target key end

     0   :  { %8 = vsyncpa [#allocation4], 0  ;;  %s1137_s0 = inlined_call_operand.hbm [shape: f32[16,128], index: 0, kind: input, shape index: {}]   ;;  %s1138_s1 = inlined_call_operand.hbm [shape: f32[128,128], index: 1, kind: input, shape index: {}]   ;;  %s1139_s2 = inlined_call_operand.hbm [shape: f32[1,128], index: 2, kind: input, shape index: {}]   ;;  %s1140_s3 = inlined_call_operand.hbm [shape: f32[16,128], index: 3, kind: output, shape index: {}]  }
   0x1   :  { %10 = vsyncpa [#allocation4 + $0x1], 0 }
   0x2   :  { %11 = vsyncpa [#allocation7], 0 }
   0x3   :  { %12 = vsyncpa [#allocation5], 0 }
   0x4   :  { %14 = vsyncpa [#allocation5 + $0x1], 0  ;;  %s879_s12 = smov 0   ;;  %s881_s13 = smov 0  }
   0x5   :  { %s883_s14 = smov 0   ;;  %s885_s15 = smov 0  }
   0x6   :  { %s887_s16 = smov 0   ;;  %s889_s17 = smov 0  }
   0x7 LB: > { %s494_s18 = sadd.s32 4294967295, %s848_s17   ;;  %s495_s19 = sadd.s32 4294967294, %s848_s17   ;;  %s848_s17 = sphi %s889_s17, %s20_s17   ;;  %s844_s16 = sphi %s887_s16, %s1162_s16   ;;  %s840_s15 = sphi %s885_s15, %s1161_s15   ;;  %s836_s14 = sphi %s883_s14, %s1160_s14   ;;  %s832_s13 = sphi %s881_s13, %s1159_s13   ;;  %s828_s12 = sphi %s879_s12, %s1158_s12  }
   0x8   : > { %p59_p0 = scmp.ne.s32.totalorder %s832_s13, %s828_s12  ;;  %p913_p1 = scmp.eq.s32.totalorder %s494_s18, 0 }
   0x9   : > { %p917_p2 = scmp.eq.s32.totalorder %s494_s18, 1  ;;  %p145_p3 = scmp.eq.s32.totalorder %s495_s19, 1 }
   0xa   : > { %s1145_s20 = scalar_select %p913_p1, 1, 0 }
   0xb   : > { %p923_p4 = por %p913_p1, %p59_p0  ;;  %p496_p5 = scmp.ge.s32.totalorder %s848_s17, 1 }
   0xc   : > { %p928_p6 = por %p145_p3, %p59_p0  ;;  %p152_p7 = scmp.lt.s32.totalorder %s848_s17, 3 }
   0xd   : > { %s1147_s22 = scalar_select %p923_p4, 1, 0 }
   0xe   : > { %s1148_s23 = scalar_select %p928_p6, 1, 0 }
   0xf   : > { %p933_p8 = pnand %p496_p5, %p152_p7  ;;  %s850_s25 = smov [#allocation6]  }
  0x10   : > { %s168_s26 = sshll.u32 %s850_s25, 4  ;;  %s851_s28 = smov [#allocation8]   ;;  %s937_s26 = int_to_ptr.vmem [resolvable:$true] %s168_s26 }
  0x11   : > { %p600_p9 = pneg %p933_p8  ;;  %s184_s29 = sshll.u32 %s851_s28, 4  ;;  %s948_s29 = int_to_ptr.vmem [resolvable:$true] %s184_s29 }
  0x12   : > { %s676_s5 = scalar_lea.hbm %s1138_s1, 2048 }
  0x13   : > { %p944_p11 = pnand %p600_p9, %p913_p1  ;;  %p677_p12 = scmp.ne.s32.totalorder %s1138_s1, %s676_s5 }
  0x14   : > { %p683_p5 = scmp.lt.u32.totalorder %s676_s5, %s1138_s1 }
  0x15   : > { %p678_p13 = pneg %p944_p11 }
  0x17   : > { %p679_p0 = pnand %p678_p13, %p677_p12 }
  0x19   : > { %p680_p3 = pneg %p679_p0 }
  0x1b   : > { %p685_p7 = pnand %p683_p5, %p680_p3 }
  0x1d   : > { %688 = shalt.err (!%p685_p7)
}
  0x1e   : > { %s689_s10 = scalar_lea.vmem %s937_s26, 2048  ;;  %p697_p1 = scmp.lt.s32.totalorder %s937_s26, %s937_s26 }
  0x1f   : > { %p690_p9 = scmp.ne.s32.totalorder %s937_s26, %s689_s10  ;;  %p698_p12 = scmp.lt.s32.totalorder %s689_s10, %s689_s10 }
  0x21   : > { %p692_p10 = pnand %p690_p9, %p678_p13  ;;  %p699_p0 = por %p698_p12, %p697_p1 }
  0x23   : > { %p693_p6 = pneg %p692_p10 }
  0x25   : > { %p700_p4 = pnand %p699_p0, %p693_p6 }
  0x27   : > { %703 = shalt.err (!%p700_p4)
}
  0x28   : > { %s852_s11 = smov 128   ;;  %s853_s18 = smov 8  }
  0x29   : > { %603 = dma.hbm_to_vmem [thread:$0]  (!%p944_p11), %s1138_s1, 2048, %s937_s26, [#allocation7], %s852_s11, %s852_s11, %s853_s18  }
  0x2a   : > { %s704_s4 = scalar_lea.hbm %s1139_s2, 16 }
  0x2b   : > { %p705_p1 = scmp.ne.s32.totalorder %s1139_s2, %s704_s4  ;;  %p711_p10 = scmp.lt.u32.totalorder %s704_s4, %s1139_s2 }
  0x2d   : > { %p707_p4 = pnand %p705_p1, %p678_p13 }
  0x2f   : > { %p708_p6 = pneg %p707_p4 }
  0x31   : > { %p713_p3 = pnand %p711_p10, %p708_p6 }
  0x33   : > { %716 = shalt.err (!%p713_p3)
}
  0x34   : > { %s717_s26 = scalar_lea.vmem %s948_s29, 16  ;;  %s724_s9 = scalar_lea.vmem %s948_s29, 32 }
  0x35   : > { %p718_p5 = scmp.ne.s32.totalorder %s948_s29, %s717_s26  ;;  %p725_p12 = scmp.lt.s32.totalorder %s948_s29, %s948_s29 }
  0x36   : > { %p726_p0 = scmp.lt.s32.totalorder %s724_s9, %s717_s26 }
  0x37   : > { %p720_p7 = pnand %p718_p5, %p678_p13 }
  0x38   : > { %p727_p1 = por %p726_p0, %p725_p12 }
  0x39   : > { %p721_p9 = pneg %p720_p7 }
  0x3b   : > { %p728_p4 = pnand %p727_p1, %p721_p9 }
  0x3d   : > { %731 = shalt.err (!%p728_p4)
}
  0x3e   : > { %606 = dma.hbm_to_vmem [thread:$0]  (!%p944_p11), %s1139_s2, 16, %s948_s29, [#allocation7]  }
  0x3f   : > { %s39_s18 = sadd.s32 1, %s844_s16  ;;  %s46_s19 = sadd.s32 1, %s836_s14 }
  0x40   : > { %p41_p13 = scmp.ge.s32.totalorder %s39_s18, 2  ;;  %p53_p6 = scmp.ne.s32.totalorder %s836_s14, %s832_s13 }
  0x41   : > { %p54_p10 = scmp.eq.s32.totalorder %s848_s17, 0  ;;  %p617_p3 = scmp.lt.s32.totalorder %s848_s17, 2 }
  0x42   : > { %s1164_s18 = smov (%p41_p13, %s39_s18), 0  ;;  %p1013_p7 = por %p917_p2, %p53_p6 }
  0x43   : > { %p55_p5 = por %p54_p10, %p53_p6  ;;  %s43_s25 = ssub.s32 %s844_s16, %s1164_s18 }
  0x44   : > { %s1151_s27 = scalar_select %p1013_p7, 1, 0 }
  0x45   : > { %s195_s28 = sand.u32 1, %s836_s14   ;;  %p44_p9 = scmp.eq.s32.totalorder %s43_s25, 0 }
  0x46   : > { %s500_s29 = sshll.u32 %s195_s28, 3  ;;  %s501_s30 = sshll.u32 %s844_s16, 7 }
  0x47   : > { %s1022_s4 = scalar_select %p44_p9, %s836_s14, %s46_s19  }
  0x48   : > { %s1027_s7 = scalar_lea.hbm %s1137_s0, %s501_s30  ;;  %s199_s21 = scalar_lea.vmem [#allocation3], %s500_s29 }
  0x49   : > { %s206_s8 = sshll.u32 %s199_s21, 4  ;;  %p1031_p2 = pnand %p617_p3, %p55_p5  ;;  %s1035_s8 = int_to_ptr.vmem [resolvable:$true] %s206_s8 }
  0x4a   : > { %s196_s9 = scalar_lea.sflag [#allocation4], %s195_s28  ;;  %s732_s10 = scalar_lea.hbm %s1027_s7, 128 }
  0x4b   : > { %p733_p11 = scmp.ne.s32.totalorder %s1027_s7, %s732_s10  ;;  %p734_p12 = pneg %p1031_p2 }
  0x4c   : > { %s737_s25 = scalar_lea.hbm %s1137_s0, 256  ;;  %p738_p4 = scmp.lt.u32.totalorder %s1027_s7, %s1137_s0 }
  0x4d   : > { %p735_p0 = pnand %p734_p12, %p733_p11  ;;  %p739_p13 = scmp.lt.u32.totalorder %s737_s25, %s732_s10 }
  0x4e   : > { %p741_p10 = scmp.lt.u32.totalorder %s732_s10, %s1027_s7 }
  0x4f   : > { %p736_p1 = pneg %p735_p0  ;;  %p740_p6 = por %p739_p13, %p738_p4 }
  0x51   : > { %p742_p3 = por %p741_p10, %p740_p6 }
  0x53   : > { %p743_p5 = pnand %p742_p3, %p736_p1 }
  0x55   : > { %746 = shalt.err (!%p743_p5)
}
  0x56   : > { %s747_s28 = scalar_lea.vmem %s1035_s8, 128  ;;  %s854_s5 = smov [#allocation3]  }
  0x57   : > { %p748_p9 = scmp.ne.s32.totalorder %s1035_s8, %s747_s28  ;;  %s752_s6 = sshll.u32 %s854_s5, 4  ;;  %s753_s6 = int_to_ptr.vmem [resolvable:$false] %s752_s6 }
  0x58   : > { %s754_s21 = scalar_lea.vmem %s753_s6, 256  ;;  %p755_p7 = scmp.lt.s32.totalorder %s1035_s8, %s753_s6 }
  0x59   : > { %p750_p11 = pnand %p748_p9, %p734_p12  ;;  %p756_p4 = scmp.lt.s32.totalorder %s754_s21, %s747_s28 }
  0x5b   : > { %p751_p0 = pneg %p750_p11  ;;  %p757_p13 = por %p756_p4, %p755_p7 }
  0x5d   : > { %p758_p6 = pnand %p757_p13, %p751_p0 }
  0x5f   : > { %761 = shalt.err (!%p758_p6)
}
  0x60   : > { %610 = dma.hbm_to_vmem [thread:$0]  (!%p1031_p2), %s1027_s7, 128, %s1035_s8, %s196_s9  }
  0x61   : > { %215 = sbr.rel (%p933_p8) target bundleno = 371 (0x173), region = 32  ;;  %s1065_s10 = sand.u32 (!%p933_p8), 1, %s832_s13  }
  0x62   : > { %s503_s11 = sshll.u32 (!%p933_p8), %s1065_s10, 3  ;;  %s218_s19 = scalar_lea.sflag (!%p933_p8), [#allocation4], %s1065_s10 }
  0x63   : > { %s1071_s25 = scalar_lea.vmem (!%p933_p8), [#allocation3], %s503_s11  ;;  %p1153_p7 = scmp.ne.s32.totalorder (!%p933_p8), %s1147_s22, 0 }
  0x68   : > { %815 = dma.done.wait (%p1153_p7), %s218_s19, 128  }
  0x69   : > { %817 = vsyncadd (%p1153_p7), %s218_s19, 4294967168  ;;  %p1154_p2 = scmp.ne.s32.totalorder %s1145_s20, 0 }
  0x6b   : > { %819 = dma.done.wait (%p1154_p2), [#allocation7], 2064  }
  0x6c   : > { %821 = vsyncadd (%p1154_p2), [#allocation7], 4294965232  ;;  %v855_v0 = vmov 0.0|0.0   ;;  %vm856_vm0 = vmmov 0   ;;  %v857_v1 = vmov 0.0   ;;  %v277_v2 = vld [vmem:[#allocation6] sm:$0xff] }
  0x6d   : > { %564 = vmatprep.subr.bf16.mxu0 %v855_v0  ;;  %561 = vmatprep.mubr.msk.f32.mxu0 %vm856_vm0, %v857_v1  ;;  %v278_v3 = vld [vmem:[#allocation6 + $0x8] sm:$0xff]  ;;  %v279_v4 = vld [vmem:[#allocation6 + $0x10] sm:$0xff]  ;;  %v280_v6 = vld [vmem:[#allocation6 + $0x18] sm:$0xff]  ;;  %s509_s20 = sshll.u32 %s840_s15, 7  ;;  %s251_s22 = scalar_lea.vmem [#allocation9], %s503_s11 }
  0x6e   : > { %v565_v5 = vpack.c.bf16 %v278_v3, %v277_v2  ;;  %v568_v7 = vpack.c.bf16 %v280_v6, %v279_v4  ;;  %v281_v8 = vld [vmem:[#allocation6 + $0x20] sm:$0xff]  ;;  %v282_v9 = vld [vmem:[#allocation6 + $0x28] sm:$0xff]  ;;  %v283_v11 = vld [vmem:[#allocation6 + $0x30] sm:$0xff]  ;;  %s385_s24 = sshll.u32 %s251_s22, 4  ;;  %s1088_s26 = scalar_lea.hbm %s1140_s3, %s509_s20  ;;  %s1090_s24 = int_to_ptr.vmem [resolvable:$true] %s385_s24 }
  0x6f   : > { %v571_v10 = vpack.c.bf16 %v282_v9, %v281_v8  ;;  %v284_v12 = vld [vmem:[#allocation6 + $0x38] sm:$0xff]  ;;  %v285_v14 = vld [vmem:[#allocation6 + $0x40] sm:$0xff]  ;;  %v286_v15 = vld [vmem:[#allocation6 + $0x48] sm:$0xff]  ;;  %s371_s9 = scalar_lea.sflag [#allocation5], %s1065_s10  ;;  %s762_s29 = scalar_lea.vmem %s1090_s24, 128 }
  0x70   : > { %566 = vmatpush3.bf16.msra.mxu0 %v565_v5  ;;  %v574_v13 = vpack.c.bf16 %v284_v12, %v283_v11  ;;  %v577_v16 = vpack.c.bf16 %v286_v15, %v285_v14  ;;  %v287_v17 = vld [vmem:[#allocation6 + $0x50] sm:$0xff]  ;;  %v288_v18 = vld [vmem:[#allocation6 + $0x58] sm:$0xff]  ;;  %v289_v20 = vld [vmem:[#allocation6 + $0x60] sm:$0xff]  ;;  %p763_p8 = scmp.ne.s32.totalorder %s1090_s24, %s762_s29  ;;  %p1155_p12 = scmp.ne.s32.totalorder %s1151_s27, 0 }
  0x71   : > { %567 = vmatprep.subr.bf16.mxu0 %v855_v0  ;;  %v580_v19 = vpack.c.bf16 %v288_v18, %v287_v17  ;;  %v290_v21 = vld [vmem:[#allocation6 + $0x68] sm:$0xff]  ;;  %v291_v23 = vld [vmem:[#allocation6 + $0x70] sm:$0xff]  ;;  %v292_v24 = vld [vmem:[#allocation6 + $0x78] sm:$0xff]  ;;  %s858_s15 = smov [#allocation9]  }
  0x72   : > { %v583_v22 = vpack.c.bf16 %v290_v21, %v289_v20  ;;  %v586_v25 = vpack.c.bf16 %v292_v24, %v291_v23  ;;  %v276_v26 = vld [vmem:[%s1071_s25] sm:$0xff]  ;;  %v507_v27 = vld [vmem:[#allocation8] ss:$0 sm:$0xff]  ;;  %p764_p1 = pnand %p763_p8, %p1155_p12  ;;  %s766_s30 = sshll.u32 %s858_s15, 4  ;;  %s767_s30 = int_to_ptr.vmem [resolvable:$false] %s766_s30 }
  0x73   : > { %v269_v28 = vadd.f32 %v507_v27, %v276_v26  ;;  %s768_s28 = scalar_lea.vmem %s767_s30, 256  ;;  %p769_p3 = scmp.lt.s32.totalorder %s1090_s24, %s767_s30 }
  0x74   : > { %569 = vmatpush3.bf16.msra.mxu0 %v568_v7  ;;  %p765_p10 = pneg %p764_p1  ;;  %p770_p5 = scmp.lt.s32.totalorder %s768_s28, %s762_s29 }
  0x75   : > { %570 = vmatprep.subr.bf16.mxu0 %v855_v0 }
  0x76   : > { %p771_p9 = por %p770_p5, %p769_p3 }
  0x78   : > { %572 = vmatpush3.bf16.msra.mxu0 %v571_v10  ;;  %p772_p11 = pnand %p771_p9, %p765_p10 }
  0x79   : > { %573 = vmatprep.subr.bf16.mxu0 %v855_v0 }
  0x7c   : > { %575 = vmatpush3.bf16.msra.mxu0 %v574_v13 }
  0x7d   : > { %576 = vmatprep.subr.bf16.mxu0 %v855_v0 }
  0x80   : > { %578 = vmatpush3.bf16.msra.mxu0 %v577_v16 }
  0x81   : > { %579 = vmatprep.subr.bf16.mxu0 %v855_v0 }
  0x84   : > { %581 = vmatpush3.bf16.msra.mxu0 %v580_v19 }
  0x85   : > { %582 = vmatprep.subr.bf16.mxu0 %v855_v0 }
  0x88   : > { %584 = vmatpush3.bf16.msra.mxu0 %v583_v22 }
  0x89   : > { %585 = vmatprep.subr.bf16.mxu0 %v855_v0 }
  0x8c   : > { %587 = vmatpush3.bf16.msra.mxu0 %v586_v25 }
  0x8f   : > { %562 = vmatmul.mubr.f32.vlgmr.msra.gmra.mrb[0].mxu0 %v276_v26 }
 0x162   : > { %v359_v29 = vpop.f32.mrb[0].mxu0 }
 0x163   : > { %v363_v30 = vadd.f32 %v359_v29, %v269_v28  ;;  %v563_v31 = vpop.f32.mrb[1].mxu0 }
 0x165   : > { %369 = vst [vmem:[%s251_s22] sm:$0xff] %v363_v30 }
 0x166   : > { %775 = shalt.err (!%p772_p11)
}
 0x167   : > { %s776_s5 = scalar_lea.hbm %s1088_s26, 128  ;;  %s780_s10 = scalar_lea.hbm %s1140_s3, 256 }
 0x168   : > { %p777_p0 = scmp.ne.s32.totalorder %s1088_s26, %s776_s5  ;;  %p781_p6 = scmp.lt.u32.totalorder %s1088_s26, %s1140_s3 }
 0x169   : > { %p782_p7 = scmp.lt.u32.totalorder %s780_s10, %s776_s5  ;;  %p784_p8 = scmp.lt.u32.totalorder %s776_s5, %s1088_s26 }
 0x16a   : > { %p778_p4 = pnand %p777_p0, %p1155_p12 }
 0x16b   : > { %p783_p2 = por %p782_p7, %p781_p6 }
 0x16c   : > { %p779_p13 = pneg %p778_p4 }
 0x16d   : > { %p785_p1 = por %p784_p8, %p783_p2 }
 0x16f   : > { %p786_p10 = pnand %p785_p1, %p779_p13 }
 0x171   : > { %789 = shalt.err (!%p786_p10)
}
 0x172   : > { %598 = dma.vmem_to_hbm [thread:$0]  (%p1155_p12), %s1090_s24, 128, %s1088_s26, %s371_s9  }
 0x173 PF: > { %s397_s25 = sand.u32 1, %s828_s12   ;;  %p1156_p3 = scmp.ne.s32.totalorder %s1148_s23, 0 }
 0x174   : > { %p1157_p5 = scmp.ge.s32.totalorder %s848_s17, 2  ;;  %s398_s20 = scalar_lea.sflag [#allocation5], %s397_s25 }
 0x176   : > { %p612_p9 = pnand %p1157_p5, %p1156_p3 }
 0x178   : > { %823 = dma.done.wait (!%p612_p9), %s398_s20, 128  }
 0x179   : > { %825 = vsyncadd (!%p612_p9), %s398_s20, 4294967168  ;;  %s20_s17 = sadd.s32 1, %s848_s17   ;;  %s1158_s12 = smov %s832_s13 }
 0x17a   : > { %p17_p11 = scmp.ge.s32.totalorder %s20_s17, 4   ;;  %s1159_s13 = smov %s836_s14 }
 0x17b   : > { %s1160_s14 = smov %s1022_s4  ;;  %s1161_s15 = smov %s844_s16 }
 0x17c   : > { %s1162_s16 = smov %s1164_s18  ;;  %19 = sbr.rel (!%p17_p11) target bundleno = 7 (0x7), region = 97 }
 0x183   :  { %403 = vsyncpa [#allocation4], 1 }
 0x184   :  { %405 = vsyncpa [#allocation4 + $0x1], 1 }
 0x185   :  { %406 = vsyncpa [#allocation7], 1 }
 0x186   :  { %407 = vsyncpa [#allocation5], 1 }
 0x187   :  { %409 = vsyncpa [#allocation5 + $0x1], 1 }

</bundles_post_ra>
